<compile_context>
chip_gen: v7x
topology: tpu7x:2x2x1
jax: 0.10.0
libtpu: 0.0.40
codegen_flags: <defaults>
</compile_context>

<pallas_src>
import functools

import jax
import jax.numpy as jnp
from jax.experimental import pallas as pl
from jax.experimental.pallas import tpu as pltpu

EPSILON = 1e-8
LOG_2PI = 1.8378770664093453  # log(2 * pi)


def _nll_kernel(x_ref, means_ref, vars_ref, pis_ref, out_ref,
                neg_half_iv_sc, mu_iv_sc, const_sc, acc_sc, *, c, inv_n):
    n_idx = pl.program_id(1)
    n_tiles = pl.num_programs(1)

    # Per-dataset constants: computed once per dataset block (first n tile), reused by all
    # subsequent n tiles.  Keeps EUP log/recip work and XLU reductions out of the inner loop.
    @pl.when(n_idx == 0)
    def _init():
        mu = means_ref[...].astype(jnp.float32)                     # [Bt, k, c]
        var = vars_ref[...].astype(jnp.float32) + EPSILON           # [Bt, k, c]
        pis = pis_ref[...].astype(jnp.float32) + EPSILON            # [Bt, 1, k]
        inv_var = 1.0 / var
        neg_half_iv_sc[...] = -0.5 * inv_var                        # fold the -0.5 here
        mu_iv_sc[...] = mu * inv_var
        log_det = jnp.sum(jnp.log(var), axis=-1)                    # [Bt, k]
        mu2_term = jnp.sum(mu * mu * inv_var, axis=-1)              # [Bt, k]
        const = ((-0.5 * c * LOG_2PI)
                 - 0.5 * log_det
                 - 0.5 * mu2_term
                 + jnp.log(pis[:, 0, :]))                           # [Bt, k]
        const_sc[...] = const[:, :, None]                           # [Bt, k, 1]
        acc_sc[...] = jnp.zeros_like(acc_sc)

    x = x_ref[...].astype(jnp.float32)                              # [Bt, tn, c]

    # sum_c (x - mu)^2 / var  ==  x^2 . inv_var - 2 x . (mu*inv_var) + sum_c mu^2*inv_var
    # (last term folded into const_sc, the -0.5 folded into neg_half_iv_sc).
    # Lane-dense result: tn sits on the lane axis of [Bt, k, tn].
    q1 = jnp.einsum('bkc,bnc->bkn', neg_half_iv_sc[...], x * x,
                    preferred_element_type=jnp.float32)             # [Bt, k, tn]
    q2 = jnp.einsum('bkc,bnc->bkn', mu_iv_sc[...], x,
                    preferred_element_type=jnp.float32)             # [Bt, k, tn]
    log_prob = const_sc[...] + q1 + q2                              # [Bt, k, tn]

    # logsumexp over the k mixture components (small sublane-axis reduce; exp is lane-dense).
    m = jnp.max(log_prob, axis=1, keepdims=True)                    # [Bt, 1, tn]
    s = jnp.sum(jnp.exp(log_prob - m), axis=1, keepdims=True)       # [Bt, 1, tn]

    # Deferred n-reduction: lane-wise partial sums; cross-lane reduce only at finalize.
    acc_sc[...] = acc_sc[...] + m + jnp.log(s)                      # [Bt, 1, tn]

    @pl.when(n_idx == n_tiles - 1)
    def _finalize():
        out_ref[...] = jnp.sum(acc_sc[...], axis=-1, keepdims=True) * inv_n  # [Bt, 1, 1]


def _vmem_capacity_bytes():
    try:
        return int(pltpu.get_tpu_info().vmem_capacity_bytes)
    except Exception:
        return 64 * 1024 * 1024  # conservative fallback (v7x per-TensorCore VMEM)


def _pick_n_tile(n, max_tile, align=8):
    """Largest tile <= max_tile that divides n and is sublane-aligned (or n itself)."""
    if n <= max_tile:
        return n
    t = (max_tile // align) * align
    while t >= align:
        if n % t == 0:
            return t
        t -= align
    return n


def _pick_b_tile(b, tn, c, k, budget_bytes, max_bt):
    """Largest divisor of b (<= max_bt) whose steady-state VMEM footprint fits the budget."""
    def footprint(bt):
        x_bytes = 2 * bt * tn * c * 4                 # x tile, double-buffered
        const_in = 2 * 2 * bt * k * c * 4             # means + variances, double-buffered
        pis_in = 2 * bt * 8 * 128 * 4                 # pis tile (padded), double-buffered
        scratch = (2 * bt * k * c                     # -0.5/var, mu/var
                   + bt * 8 * 128                     # per-component constants (padded)
                   + bt * 8 * max(tn, 128)) * 4       # lane-wise lse accumulator (padded)
        return x_bytes + const_in + pis_in + scratch

    best = 1
    for cand in range(1, max_bt + 1):
        if b % cand == 0 and footprint(cand) <= budget_bytes:
            best = cand
    return best


def _tile_plan(b, n, c, k):
    cap = _vmem_capacity_bytes()
    # v7x (64 MiB/TC) -> 48 MiB limit; v5e/v6e (128 MiB) -> 96 MiB limit (v5e default is 16).
    vmem_limit = min((3 * cap) // 4, 100 << 20)
    budget = (2 * vmem_limit) // 3                    # steady-state data footprint target
    max_tn = 2048 if cap >= (96 << 20) else 1024
    tn = _pick_n_tile(n, max_tile=max_tn)
    # Keep grid[0] >= 2 when possible so the parallel batch axis can shard across the
    # two TensorCores of a v7x chip (harmless on 1-TC v5e/v6e).
    max_bt = b if b < 2 else max(1, (b + 1) // 2)
    bt = _pick_b_tile(b, tn, c, k, budget, max_bt)
    return bt, tn, vmem_limit


def log_likelihood(x, means, variances, pis):
    """Negative average log-likelihood (scalar), matching the PyTorch module."""
    b, n, c = x.shape
    k = means.shape[1]
    pis_r = pis.reshape(b, 1, k)

    bt, tn, vmem_limit = _tile_plan(b, n, c, k)

    kernel = functools.partial(_nll_kernel, c=c, inv_n=1.0 / n)

    per_ds = pl.pallas_call(
        kernel,
        out_shape=jax.ShapeDtypeStruct((b, 1, 1), jnp.float32),
        grid_spec=pltpu.PrefetchScalarGridSpec(
            num_scalar_prefetch=0,
            grid=(b // bt, n // tn),
            in_specs=[
                pl.BlockSpec((bt, tn, c), lambda i, j: (i, j, 0)),
                pl.BlockSpec((bt, k, c), lambda i, j: (i, 0, 0)),
                pl.BlockSpec((bt, k, c), lambda i, j: (i, 0, 0)),
                pl.BlockSpec((bt, 1, k), lambda i, j: (i, 0, 0)),
            ],
            out_specs=pl.BlockSpec((bt, 1, 1), lambda i, j: (i, 0, 0)),
            scratch_shapes=[
                pltpu.VMEM((bt, k, c), jnp.float32),   # -0.5 / var
                pltpu.VMEM((bt, k, c), jnp.float32),   # mu / var
                pltpu.VMEM((bt, k, 1), jnp.float32),   # per-component constant term
                pltpu.VMEM((bt, 1, tn), jnp.float32),  # lane-wise lse partial sums
            ],
        ),
        compiler_params=pltpu.CompilerParams(
            dimension_semantics=("parallel", "arbitrary"),
            vmem_limit_bytes=vmem_limit,
        ),
    )(x, means, variances, pis_r)

    # Final reduction over datasets + negation done in the wrapper (keeps the batch axis
    # free of cross-step dependencies so it can shard across TensorCores).
    return -jnp.mean(per_ds[:, 0, 0])


def _reference(x, means, variances, pis):
    """Pure-JAX reference mirroring the PyTorch forward exactly."""
    c = x.shape[2]
    variances = variances + EPSILON
    pis = pis + EPSILON
    diff = x[:, :, None, :] - means[:, None, :, :]                       # [b, n, k, c]
    logp = (
        -0.5 * c * jnp.log(2.0 * jnp.pi)
        - 0.5 * jnp.sum(jnp.log(variances), axis=-1)[:, None, :]
        - 0.5 * jnp.sum(diff * diff / variances[:, None, :, :], axis=-1)
    )
    logp = logp + jnp.log(pis)[:, None, :]
    avg = jnp.mean(jax.scipy.special.logsumexp(logp, axis=2), axis=1)
    return -jnp.mean(avg)


if __name__ == "__main__":
    b, n, k, c = 2, 16, 4, 32
    key = jax.random.PRNGKey(0)
    kx, km, kv, kp = jax.random.split(key, 4)
    x = jax.random.normal(kx, (b, n, c), dtype=jnp.float32)
    means = jax.random.normal(km, (b, k, c), dtype=jnp.float32)
    variances = jax.nn.softplus(jax.random.normal(kv, (b, k, c), dtype=jnp.float32))
    pis = jax.nn.softmax(jax.random.normal(kp, (b, k), dtype=jnp.float32), axis=-1)

    out = jax.block_until_ready(log_likelihood(x, means, variances, pis))
    ref = jax.block_until_ready(_reference(x, means, variances, pis))
    assert jnp.allclose(out, ref, rtol=1e-5, atol=1e-5), (out, ref)
    print("KERNEL_OK")
</pallas_src>

<mosaic_0001>
module attributes {stable_mosaic.version = 11 : i64} {
  func.func @_nll_kernel(%arg0: i32, %arg1: i32, %arg2: memref<1x16x32xf32, #tpu.memory_space<vmem>>, %arg3: memref<1x4x32xf32, #tpu.memory_space<vmem>>, %arg4: memref<1x4x32xf32, #tpu.memory_space<vmem>>, %arg5: memref<1x1x4xf32, #tpu.memory_space<vmem>>, %arg6: memref<1x1x1xf32, #tpu.memory_space<vmem>>, %arg7: memref<1x4x32xf32, #tpu.memory_space<vmem>>, %arg8: memref<1x4x32xf32, #tpu.memory_space<vmem>>, %arg9: memref<1x4x1xf32, #tpu.memory_space<vmem>>, %arg10: memref<1x1x16xf32, #tpu.memory_space<vmem>>) attributes {dimension_semantics = [#tpu.dimension_semantics<parallel>, #tpu.dimension_semantics<arbitrary>], iteration_bounds = array<i64: 2, 1>, scalar_prefetch = 0 : i64, scratch_operands = 4 : i64, tpu.core_type = #tpu.core_type<tc>, window_params = [{transform_indices = @transform_0, window_bounds = array<i64: 1, 16, 32>}, {transform_indices = @transform_1, window_bounds = array<i64: 1, 4, 32>}, {transform_indices = @transform_2, window_bounds = array<i64: 1, 4, 32>}, {transform_indices = @transform_3, window_bounds = array<i64: 1, 1, 4>}, {transform_indices = @transform_4, window_bounds = array<i64: 1, 1, 1>}]} {
    %c0_i32 = arith.constant 0 : i32
    %0 = arith.cmpi eq, %arg1, %c0_i32 : i32
    %1 = arith.extui %0 : i1 to i32
    %c0_i32_0 = arith.constant 0 : i32
    %2 = arith.cmpi ne, %1, %c0_i32_0 : i32
    scf.if %2 {
      %c0_23 = arith.constant 0 : index
      %c0_24 = arith.constant 0 : index
      %c0_25 = arith.constant 0 : index
      %28 = vector.load %arg3[%c0_23, %c0_24, %c0_25] : memref<1x4x32xf32, #tpu.memory_space<vmem>>, vector<1x4x32xf32>
      %c0_26 = arith.constant 0 : index
      %c0_27 = arith.constant 0 : index
      %c0_28 = arith.constant 0 : index
      %29 = vector.load %arg4[%c0_26, %c0_27, %c0_28] : memref<1x4x32xf32, #tpu.memory_space<vmem>>, vector<1x4x32xf32>
      %cst_29 = arith.constant 9.99999993E-9 : f32
      %30 = vector.broadcast %cst_29 : f32 to vector<1x4x32xf32>
      %31 = arith.addf %29, %30 : vector<1x4x32xf32>
      %c0_30 = arith.constant 0 : index
      %c0_31 = arith.constant 0 : index
      %c0_32 = arith.constant 0 : index
      %32 = vector.load %arg5[%c0_30, %c0_31, %c0_32] : memref<1x1x4xf32, #tpu.memory_space<vmem>>, vector<1x1x4xf32>
      %cst_33 = arith.constant 9.99999993E-9 : f32
      %33 = vector.broadcast %cst_33 : f32 to vector<1x1x4xf32>
      %34 = arith.addf %32, %33 : vector<1x1x4xf32>
      %cst_34 = arith.constant 1.000000e+00 : f32
      %35 = vector.broadcast %cst_34 : f32 to vector<1x4x32xf32>
      %36 = arith.divf %35, %31 : vector<1x4x32xf32>
      %cst_35 = arith.constant -5.000000e-01 : f32
      %37 = vector.broadcast %cst_35 : f32 to vector<1x4x32xf32>
      %38 = arith.mulf %37, %36 : vector<1x4x32xf32>
      %c0_36 = arith.constant 0 : index
      %c0_37 = arith.constant 0 : index
      %c0_38 = arith.constant 0 : index
      %39 = vector.load %arg7[%c0_36, %c0_37, %c0_38] : memref<1x4x32xf32, #tpu.memory_space<vmem>>, vector<1x4x32xf32>
      tpu.vector_store %arg7[%c0_36, %c0_37, %c0_38], %38 {strides = array<i32>} : memref<1x4x32xf32, #tpu.memory_space<vmem>>, vector<1x4x32xf32>,
      %40 = arith.mulf %28, %36 : vector<1x4x32xf32>
      %c0_39 = arith.constant 0 : index
      %c0_40 = arith.constant 0 : index
      %c0_41 = arith.constant 0 : index
      %41 = vector.load %arg8[%c0_39, %c0_40, %c0_41] : memref<1x4x32xf32, #tpu.memory_space<vmem>>, vector<1x4x32xf32>
      tpu.vector_store %arg8[%c0_39, %c0_40, %c0_41], %40 {strides = array<i32>} : memref<1x4x32xf32, #tpu.memory_space<vmem>>, vector<1x4x32xf32>,
      %42 = math.log %31 : vector<1x4x32xf32>
      %cst_42 = arith.constant dense<0.000000e+00> : vector<1x4xf32>
      %43 = vector.multi_reduction <add>, %42, %cst_42 [2] : vector<1x4x32xf32> to vector<1x4xf32>
      %44 = arith.mulf %28, %28 : vector<1x4x32xf32>
      %45 = arith.mulf %44, %36 : vector<1x4x32xf32>
      %cst_43 = arith.constant dense<0.000000e+00> : vector<1x4xf32>
      %46 = vector.multi_reduction <add>, %45, %cst_43 [2] : vector<1x4x32xf32> to vector<1x4xf32>
      %cst_44 = arith.constant 5.000000e-01 : f32
      %47 = vector.broadcast %cst_44 : f32 to vector<1x4xf32>
      %48 = arith.mulf %47, %43 : vector<1x4xf32>
      %cst_45 = arith.constant -29.4060326 : f32
      %49 = vector.broadcast %cst_45 : f32 to vector<1x4xf32>
      %50 = arith.subf %49, %48 : vector<1x4xf32>
      %cst_46 = arith.constant 5.000000e-01 : f32
      %51 = vector.broadcast %cst_46 : f32 to vector<1x4xf32>
      %52 = arith.mulf %51, %46 : vector<1x4xf32>
      %53 = arith.subf %50, %52 : vector<1x4xf32>
      %54 = vector.shape_cast %34 : vector<1x1x4xf32> to vector<1x4xf32>
      %55 = math.log %54 : vector<1x4xf32>
      %56 = arith.addf %53, %55 : vector<1x4xf32>
      %57 = vector.shape_cast %56 : vector<1x4xf32> to vector<1x4x1xf32>
      %c0_47 = arith.constant 0 : index
      %c0_48 = arith.constant 0 : index
      %c0_49 = arith.constant 0 : index
      %58 = vector.load %arg9[%c0_47, %c0_48, %c0_49] : memref<1x4x1xf32, #tpu.memory_space<vmem>>, vector<1x4x1xf32>
      tpu.vector_store %arg9[%c0_47, %c0_48, %c0_49], %57 {strides = array<i32>} : memref<1x4x1xf32, #tpu.memory_space<vmem>>, vector<1x4x1xf32>,
      %cst_50 = arith.constant 0.000000e+00 : f32
      %59 = vector.broadcast %cst_50 : f32 to vector<1x1x16xf32>
      %c0_51 = arith.constant 0 : index
      %c0_52 = arith.constant 0 : index
      %c0_53 = arith.constant 0 : index
      %60 = vector.load %arg10[%c0_51, %c0_52, %c0_53] : memref<1x1x16xf32, #tpu.memory_space<vmem>>, vector<1x1x16xf32>
      tpu.vector_store %arg10[%c0_51, %c0_52, %c0_53], %59 {strides = array<i32>} : memref<1x1x16xf32, #tpu.memory_space<vmem>>, vector<1x1x16xf32>,
    } else {
    }
    %c0 = arith.constant 0 : index
    %c0_1 = arith.constant 0 : index
    %c0_2 = arith.constant 0 : index
    %3 = vector.load %arg2[%c0, %c0_1, %c0_2] : memref<1x16x32xf32, #tpu.memory_space<vmem>>, vector<1x16x32xf32>
    %c0_3 = arith.constant 0 : index
    %c0_4 = arith.constant 0 : index
    %c0_5 = arith.constant 0 : index
    %4 = vector.load %arg7[%c0_3, %c0_4, %c0_5] : memref<1x4x32xf32, #tpu.memory_space<vmem>>, vector<1x4x32xf32>
    %5 = arith.mulf %3, %3 : vector<1x16x32xf32>
    "tpu.trace_start"() <{level = 10 : i32, message = "bkc,bnc->bkn"}> : () -> ()
    %cst = arith.constant dense<0.000000e+00> : vector<1x4x16xf32>
    %6 = tpu.matmul %4, %5, %cst {dimension_numbers = #tpu.dot_dimension_numbers<[2], [2], [1], [1], [0, 0, 0, 1, 1, 1], [0], [0]>} : vector<1x4x32xf32>, vector<1x16x32xf32>, vector<1x4x16xf32> -> vector<1x4x16xf32>
    "tpu.trace_stop"() : () -> ()
    %c0_6 = arith.constant 0 : index
    %c0_7 = arith.constant 0 : index
    %c0_8 = arith.constant 0 : index
    %7 = vector.load %arg8[%c0_6, %c0_7, %c0_8] : memref<1x4x32xf32, #tpu.memory_space<vmem>>, vector<1x4x32xf32>
    "tpu.trace_start"() <{level = 10 : i32, message = "bkc,bnc->bkn"}> : () -> ()
    %cst_9 = arith.constant dense<0.000000e+00> : vector<1x4x16xf32>
    %8 = tpu.matmul %7, %3, %cst_9 {dimension_numbers = #tpu.dot_dimension_numbers<[2], [2], [1], [1], [0, 0, 0, 1, 1, 1], [0], [0]>} : vector<1x4x32xf32>, vector<1x16x32xf32>, vector<1x4x16xf32> -> vector<1x4x16xf32>
    "tpu.trace_stop"() : () -> ()
    %c0_10 = arith.constant 0 : index
    %c0_11 = arith.constant 0 : index
    %c0_12 = arith.constant 0 : index
    %9 = vector.load %arg9[%c0_10, %c0_11, %c0_12] : memref<1x4x1xf32, #tpu.memory_space<vmem>>, vector<1x4x1xf32>
    %10 = vector.broadcast %9 : vector<1x4x1xf32> to vector<1x4x16xf32>
    %11 = arith.addf %10, %6 : vector<1x4x16xf32>
    %12 = arith.addf %11, %8 : vector<1x4x16xf32>
    %cst_13 = arith.constant dense<0xFF800000> : vector<1x16xf32>
    %13 = vector.multi_reduction <maximumf>, %12, %cst_13 [1] : vector<1x4x16xf32> to vector<1x16xf32>
    %14 = vector.shape_cast %13 : vector<1x16xf32> to vector<1x1x16xf32>
    %15 = vector.broadcast %14 : vector<1x1x16xf32> to vector<1x4x16xf32>
    %16 = arith.subf %12, %15 : vector<1x4x16xf32>
    %17 = math.exp %16 : vector<1x4x16xf32>
    %cst_14 = arith.constant dense<0.000000e+00> : vector<1x16xf32>
    %18 = vector.multi_reduction <add>, %17, %cst_14 [1] : vector<1x4x16xf32> to vector<1x16xf32>
    %19 = vector.shape_cast %18 : vector<1x16xf32> to vector<1x1x16xf32>
    %c0_15 = arith.constant 0 : index
    %c0_16 = arith.constant 0 : index
    %c0_17 = arith.constant 0 : index
    %20 = vector.load %arg10[%c0_15, %c0_16, %c0_17] : memref<1x1x16xf32, #tpu.memory_space<vmem>>, vector<1x1x16xf32>
    %21 = arith.addf %20, %14 : vector<1x1x16xf32>
    %22 = math.log %19 : vector<1x1x16xf32>
    %23 = arith.addf %21, %22 : vector<1x1x16xf32>
    %c0_18 = arith.constant 0 : index
    %c0_19 = arith.constant 0 : index
    %c0_20 = arith.constant 0 : index
    %24 = vector.load %arg10[%c0_18, %c0_19, %c0_20] : memref<1x1x16xf32, #tpu.memory_space<vmem>>, vector<1x1x16xf32>
    tpu.vector_store %arg10[%c0_18, %c0_19, %c0_20], %23 {strides = array<i32>} : memref<1x1x16xf32, #tpu.memory_space<vmem>>, vector<1x1x16xf32>,
    %c0_i32_21 = arith.constant 0 : i32
    %25 = arith.cmpi eq, %arg1, %c0_i32_21 : i32
    %26 = arith.extui %25 : i1 to i32
    %c0_i32_22 = arith.constant 0 : i32
    %27 = arith.cmpi ne, %26, %c0_i32_22 : i32
    scf.if %27 {
      %c0_23 = arith.constant 0 : index
      %c0_24 = arith.constant 0 : index
      %c0_25 = arith.constant 0 : index
      %28 = vector.load %arg10[%c0_23, %c0_24, %c0_25] : memref<1x1x16xf32, #tpu.memory_space<vmem>>, vector<1x1x16xf32>
      %cst_26 = arith.constant dense<0.000000e+00> : vector<1x1xf32>
      %29 = vector.multi_reduction <add>, %28, %cst_26 [2] : vector<1x1x16xf32> to vector<1x1xf32>
      %30 = vector.shape_cast %29 : vector<1x1xf32> to vector<1x1x1xf32>
      %cst_27 = arith.constant 6.250000e-02 : f32
      %31 = vector.broadcast %cst_27 : f32 to vector<1x1x1xf32>
      %32 = arith.mulf %30, %31 : vector<1x1x1xf32>
      %c0_28 = arith.constant 0 : index
      %c0_29 = arith.constant 0 : index
      %c0_30 = arith.constant 0 : index
      %33 = vector.load %arg6[%c0_28, %c0_29, %c0_30] : memref<1x1x1xf32, #tpu.memory_space<vmem>>, vector<1x1x1xf32>
      tpu.vector_store %arg6[%c0_28, %c0_29, %c0_30], %32 {strides = array<i32>} : memref<1x1x1xf32, #tpu.memory_space<vmem>>, vector<1x1x1xf32>,
    } else {
    }
    return
  }
  func.func @transform_0(%arg0: i32, %arg1: i32) -> (i32, i32, i32) {
    %c0_i32 = arith.constant 0 : i32
    %c0_i32_0 = arith.constant 0 : i32
    return %arg0, %arg1, %c0_i32 : i32, i32, i32
  }
  func.func @transform_1(%arg0: i32, %arg1: i32) -> (i32, i32, i32) {
    %c0_i32 = arith.constant 0 : i32
    %c0_i32_0 = arith.constant 0 : i32
    %c0_i32_1 = arith.constant 0 : i32
    return %arg0, %c0_i32, %c0_i32_0 : i32, i32, i32
  }
  func.func @transform_2(%arg0: i32, %arg1: i32) -> (i32, i32, i32) {
    %c0_i32 = arith.constant 0 : i32
    %c0_i32_0 = arith.constant 0 : i32
    %c0_i32_1 = arith.constant 0 : i32
    return %arg0, %c0_i32, %c0_i32_0 : i32, i32, i32
  }
  func.func @transform_3(%arg0: i32, %arg1: i32) -> (i32, i32, i32) {
    %c0_i32 = arith.constant 0 : i32
    %c0_i32_0 = arith.constant 0 : i32
    %c0_i32_1 = arith.constant 0 : i32
    return %arg0, %c0_i32, %c0_i32_0 : i32, i32, i32
  }
  func.func @transform_4(%arg0: i32, %arg1: i32) -> (i32, i32, i32) {
    %c0_i32 = arith.constant 0 : i32
    %c0_i32_0 = arith.constant 0 : i32
    %c0_i32_1 = arith.constant 0 : i32
    return %arg0, %c0_i32, %c0_i32_0 : i32, i32, i32
  }
}

</mosaic_0001>

<bundles_post_ra>
// kernel: tpu_custom_call.1
= control target key start
LH: loop header
LB: loop body
LE: loop exit
PB: predicated region body
PF: predicated region fallthrough
CT: control target
= control target key end

     0   :  { %s1236_s0 = inlined_call_operand.hbm [shape: f32[2,16,32], index: 0, kind: input, shape index: {}]   ;;  %s1237_s1 = inlined_call_operand.hbm [shape: f32[2,4,32], index: 1, kind: input, shape index: {}]   ;;  %s1238_s2 = inlined_call_operand.hbm [shape: f32[2,4,32], index: 2, kind: input, shape index: {}]   ;;  %s1239_s3 = inlined_call_operand.vmem [shape: f32[2,1,4], index: 3, kind: input, shape index: {}]   ;;  %s1240_s4 = inlined_call_operand.vmem [shape: f32[2,1,1], index: 4, kind: output, shape index: {}]  }
   0x1   :  { %1244 = sst [smem:[#allocation13_spill]] %s1237_s1 }
   0x2   :  { %9 = vsyncpa [#allocation7], 0 }
   0x3   :  { %11 = vsyncpa [#allocation7 + $0x1], 0 }
   0x4   :  { %12 = vsyncpa [#allocation9], 0 }
   0x5   :  { %14 = vsyncpa [#allocation9 + $0x1], 0  ;;  %s1009_s15 = smov 0   ;;  %s1011_s16 = smov 0  }
   0x6   :  { %s1013_s17 = smov 0   ;;  %s1015_s18 = smov 0  }
   0x7   :  { %s1017_s19 = smov 0   ;;  %s1019_s20 = smov 0  }
   0x8 LB: > { %s1242_s21 = sadd.s32 4294967295, %s973_s20   ;;  %s32_s22 = sadd.s32 1, %s969_s19  ;;  %s973_s20 = sphi %s1019_s20, %s20_s20   ;;  %s969_s19 = sphi %s1017_s19, %s1258_s19   ;;  %s965_s18 = sphi %s1015_s18, %s1257_s18   ;;  %s961_s17 = sphi %s1013_s17, %s1256_s17   ;;  %s957_s16 = sphi %s1011_s16, %s1255_s16   ;;  %s953_s15 = sphi %s1009_s15, %s1254_s15  }
   0x9   : > { %p34_p0 = scmp.ge.s32.totalorder %s32_s22, 2  ;;  %s41_s23 = sadd.s32 1, %s961_s17 }
   0xa   : > { %p48_p1 = scmp.ne.s32.totalorder %s961_s17, %s957_s16  ;;  %p49_p2 = scmp.eq.s32.totalorder %s973_s20, 0 }
   0xb   : > { %s1260_s22 = smov (%p34_p0, %s32_s22), 0  ;;  %p54_p4 = scmp.ne.s32.totalorder %s957_s16, %s953_s15 }
   0xc   : > { %p50_p3 = por %p49_p2, %p48_p1  ;;  %s36_s24 = ssub.s32 %s969_s19, %s1260_s22 }
   0xd   : > { %p55_p5 = scmp.eq.s32.totalorder %s1242_s21, 0  ;;  %p39_p6 = scmp.eq.s32.totalorder %s36_s24, 0 }
   0xe   : > { %p762_p8 = scmp.lt.s32.totalorder %s973_s20, 2  ;;  %s1059_s27 = sand.u32 1, %s961_s17  }
   0xf   : > { %p1050_p7 = por %p55_p5, %p54_p4  ;;  %s205_s29 = sand.u32 1, %s973_s20  }
  0x10   : > { %s1056_s26 = scalar_select %p39_p6, %s961_s17, %s41_s23  }
  0x11   : > { %s1245_s25 = scalar_select %p1050_p7, 1, 0 }
  0x12   : > { %p1061_p9 = pnand %p762_p8, %p50_p3  ;;  %s699_s30 = sshll.u32 %s1059_s27, 2 }
  0x13   : > { %s700_s5 = sshll.u32 %s969_s19, 6  ;;  %s1247_s1 = sld [smem:[#allocation13_spill]] }
  0x14   : > { %s1246_s28 = scalar_select %p1061_p9, 1, 0 }
  0x15   : > { %s209_s9 = scalar_lea.vmem [#allocation8], %s699_s30  ;;  %s1079_s11 = scalar_lea.sflag [#allocation9], %s205_s29 }
  0x16   : > { %s216_s10 = sshll.u32 %s209_s9, 4  ;;  %p1085_p11 = pneg %p1061_p9  ;;  %s1077_s10 = int_to_ptr.vmem [resolvable:$true] %s216_s10 }
  0x19   : > { %s1073_s8 = scalar_lea.hbm %s1247_s1, %s700_s5  ;;  %s834_s23 = scalar_lea.hbm %s1247_s1, 128 }
  0x1a   : > { %s829_s12 = scalar_lea.hbm %s1073_s8, 64  ;;  %p835_p0 = scmp.lt.u32.totalorder %s1073_s8, %s1247_s1 }
  0x1b   : > { %p830_p10 = scmp.ne.s32.totalorder %s1073_s8, %s829_s12  ;;  %p836_p1 = scmp.lt.u32.totalorder %s834_s23, %s829_s12 }
  0x1c   : > { %p838_p3 = scmp.lt.u32.totalorder %s829_s12, %s1073_s8 }
  0x1d   : > { %p832_p12 = pnand %p1085_p11, %p830_p10  ;;  %p837_p2 = por %p836_p1, %p835_p0 }
  0x1f   : > { %p833_p13 = pneg %p832_p12  ;;  %p839_p4 = por %p838_p3, %p837_p2 }
  0x21   : > { %p840_p5 = pnand %p839_p4, %p833_p13 }
  0x23   : > { %843 = shalt.err (!%p840_p5)
}
  0x24   : > { %s844_s29 = scalar_lea.vmem %s1077_s10, 64  ;;  %s975_s7 = smov [#allocation8]  }
  0x25   : > { %p845_p6 = scmp.ne.s32.totalorder %s1077_s10, %s844_s29  ;;  %s849_s9 = sshll.u32 %s975_s7, 4  ;;  %s850_s9 = int_to_ptr.vmem [resolvable:$false] %s849_s9 }
  0x26   : > { %s851_s14 = scalar_lea.vmem %s850_s9, 128  ;;  %p852_p12 = scmp.lt.s32.totalorder %s1077_s10, %s850_s9 }
  0x27   : > { %p847_p8 = pnand %p845_p6, %p1085_p11  ;;  %p853_p7 = scmp.lt.s32.totalorder %s851_s14, %s844_s29 }
  0x29   : > { %p848_p10 = pneg %p847_p8  ;;  %p854_p0 = por %p853_p7, %p852_p12 }
  0x2b   : > { %p855_p1 = pnand %p854_p0, %p848_p10 }
  0x2d   : > { %858 = shalt.err (!%p855_p1)
}
  0x2e   : > { %758 = dma.hbm_to_vmem [thread:$0]  (!%p1061_p9), %s1073_s8, 64, %s1077_s10, %s1079_s11  }
  0x2f   : > { %s1114_s23 = scalar_lea.hbm %s1238_s2, %s700_s5  ;;  %p703_p7 = scmp.ge.s32.totalorder %s973_s20, 1 }
  0x30   : > { %p245_p13 = scmp.lt.s32.totalorder %s973_s20, 3  ;;  %s696_s6 = sshll.u32 %s1059_s27, 4 }
  0x31   : > { %s715_s29 = sshll.u32 %s969_s19, 8  ;;  %s186_s8 = scalar_lea.vmem [#allocation6], %s696_s6 }
  0x32   : > { %p1118_p2 = pnand %p703_p7, %p245_p13  ;;  %s1127_s14 = scalar_lea.hbm %s1236_s0, %s715_s29 }
  0x33   : > { %s195_s5 = sshll.u32 %s186_s8, 4  ;;  %s1133_s10 = scalar_lea.vmem [#allocation10], %s699_s30  ;;  %s1129_s5 = int_to_ptr.vmem [resolvable:$true] %s195_s5 }
  0x34   : > { %s1249_s24 = scalar_select %p1118_p2, 1, 0 }
  0x35   : > { %s234_s12 = sshll.u32 %s1133_s10, 4  ;;  %s183_s15 = scalar_lea.sflag [#allocation7], %s1059_s27  ;;  %s235_s12 = int_to_ptr.vmem [resolvable:$true] %s234_s12 }
  0x36   : > { %s859_s21 = scalar_lea.hbm %s1127_s14, 256  ;;  %s864_s9 = scalar_lea.hbm %s1236_s0, 512 }
  0x37   : > { %p860_p3 = scmp.ne.s32.totalorder %s1127_s14, %s859_s21  ;;  %p865_p6 = scmp.lt.u32.totalorder %s1127_s14, %s1236_s0 }
  0x38   : > { %p866_p8 = scmp.lt.u32.totalorder %s864_s9, %s859_s21  ;;  %p868_p12 = scmp.lt.u32.totalorder %s859_s21, %s1127_s14 }
  0x39   : > { %p862_p4 = pnand %p860_p3, %p1085_p11 }
  0x3a   : > { %p867_p10 = por %p866_p8, %p865_p6 }
  0x3b   : > { %p863_p5 = pneg %p862_p4 }
  0x3c   : > { %p869_p0 = por %p868_p12, %p867_p10 }
  0x3e   : > { %p870_p1 = pnand %p869_p0, %p863_p5 }
  0x40   : > { %873 = shalt.err (!%p870_p1)
}
  0x41   : > { %s874_s30 = scalar_lea.vmem %s1129_s5, 256  ;;  %s976_s8 = smov [#allocation6]  }
  0x42   : > { %p875_p7 = scmp.ne.s32.totalorder %s1129_s5, %s874_s30  ;;  %s879_s29 = sshll.u32 %s976_s8, 4  ;;  %s880_s29 = int_to_ptr.vmem [resolvable:$false] %s879_s29 }
  0x43   : > { %s881_s1 = scalar_lea.vmem %s880_s29, 512  ;;  %p882_p4 = scmp.lt.s32.totalorder %s1129_s5, %s880_s29 }
  0x44   : > { %p877_p13 = pnand %p875_p7, %p1085_p11  ;;  %p883_p2 = scmp.lt.s32.totalorder %s881_s1, %s874_s30 }
  0x46   : > { %p878_p3 = pneg %p877_p13  ;;  %p884_p6 = por %p883_p2, %p882_p4 }
  0x48   : > { %p885_p8 = pnand %p884_p6, %p878_p3 }
  0x4a   : > { %888 = shalt.err (!%p885_p8)
}
  0x4b   : > { %s977_s21 = smov 128   ;;  %s978_s7 = smov 8  }
  0x4c   : > { %755 = dma.hbm_to_vmem [thread:$0]  (!%p1061_p9), %s1127_s14, 256, %s1129_s5, %s183_s15, %s977_s21, %s977_s21, %s978_s7  }
  0x4d   : > { %s889_s9 = scalar_lea.hbm %s1114_s23, 64  ;;  %s894_s8 = scalar_lea.hbm %s1238_s2, 128 }
  0x4e   : > { %p890_p2 = scmp.ne.s32.totalorder %s1114_s23, %s889_s9  ;;  %p895_p12 = scmp.lt.u32.totalorder %s1114_s23, %s1238_s2 }
  0x4f   : > { %p896_p0 = scmp.lt.u32.totalorder %s894_s8, %s889_s9  ;;  %p898_p7 = scmp.lt.u32.totalorder %s889_s9, %s1114_s23 }
  0x50   : > { %p892_p5 = pnand %p890_p2, %p1085_p11 }
  0x51   : > { %p897_p1 = por %p896_p0, %p895_p12 }
  0x52   : > { %p893_p10 = pneg %p892_p5 }
  0x53   : > { %p899_p13 = por %p898_p7, %p897_p1 }
  0x55   : > { %p900_p3 = pnand %p899_p13, %p893_p10 }
  0x57   : > { %903 = shalt.err (!%p900_p3)
}
  0x58   : > { %s904_s27 = scalar_lea.vmem %s235_s12, 64  ;;  %s979_s14 = smov [#allocation10]  }
  0x59   : > { %p905_p4 = scmp.ne.s32.totalorder %s235_s12, %s904_s27  ;;  %s909_s5 = sshll.u32 %s979_s14, 4  ;;  %s910_s5 = int_to_ptr.vmem [resolvable:$false] %s909_s5 }
  0x5a   : > { %s911_s10 = scalar_lea.vmem %s910_s5, 128  ;;  %p912_p2 = scmp.lt.s32.totalorder %s235_s12, %s910_s5 }
  0x5b   : > { %p907_p6 = pnand %p905_p4, %p1085_p11  ;;  %p913_p5 = scmp.lt.s32.totalorder %s911_s10, %s904_s27 }
  0x5d   : > { %p908_p8 = pneg %p907_p6  ;;  %p914_p9 = por %p913_p5, %p912_p2 }
  0x5f   : > { %p915_p0 = pnand %p914_p9, %p908_p8 }
  0x61   : > { %918 = shalt.err (!%p915_p0)
}
  0x62   : > { %p1250_p12 = scmp.ne.s32.totalorder %s1246_s28, 0  ;;  %p1251_p10 = scmp.ne.s32.totalorder %s1249_s24, 0 }
  0x63   : > { %s251_s13 = sand.u32 (!%p1251_p10), 1, %s957_s16   ;;  %p1252_p11 = scmp.ne.s32.totalorder (!%p1251_p10), %s1245_s25, 0 }
  0x64   : > { %761 = dma.hbm_to_vmem [thread:$0]  (!%p1250_p12), %s1114_s23, 64, %s235_s12, %s1079_s11  }
  0x65   : > { %249 = sbr.rel (%p1251_p10) target bundleno = 632 (0x278), region = 36  ;;  %s704_s15 = sshll.u32 (!%p1251_p10), %s251_s13, 4 }
  0x66   : > { %s252_s21 = scalar_lea.sflag (!%p1251_p10), [#allocation7], %s251_s13  ;;  %s255_s7 = scalar_lea.vmem (!%p1251_p10), [#allocation6], %s704_s15 }
  0x6c   : > { %944 = dma.done.wait (%p1252_p11), %s252_s21, 256  }
  0x6d   : > { %946 = vsyncadd (%p1252_p11), %s252_s21, 4294967040  ;;  %s1253_s9 = sadd.s32 4294967295, %s973_s20   ;;  %s705_s6 = sshll.u32 %s251_s13, 2 }
  0x6e   : > { %s260_s28 = sand.u32 1, %s1253_s9   ;;  %s1189_s23 = scalar_lea.vmem [#allocation8], %s705_s6 }
  0x6f   : > { %s261_s11 = scalar_lea.sflag [#allocation9], %s260_s28 }
  0x70   : > { %948 = dma.done.wait (%p1252_p11), %s261_s11, 128  }
  0x71   : > { %950 = vsyncadd (%p1252_p11), %s261_s11, 4294967168  ;;  %p310_p9 = scmp.lt.s32.totalorder %s965_s18, 1  ;;  %v980_v0 = vmov 0.0|0.0   ;;  %vm981_vm0 = vmmov 0   ;;  %v982_v1 = vmov 0.0   ;;  %vm367_vm1 = vcmask 261120  }
  0x72   : > { %736 = vmatprep.subr.bf16.mxu1 %v980_v0  ;;  %740 = vmatprep.subr.bf16.mxu0 %v980_v0  ;;  %s273_s30 = scalar_lea.vmem [#allocation10], %s705_s6  ;;  %v362_v6 = vld [vmem:[%s255_s7] sm:$0xff]  ;;  %v363_v7 = vld [vmem:[%s255_s7 + $0x8] sm:$0xff]  ;;  %vm738_vm2 = vmpackc.low %vm367_vm1, %vm367_vm1  ;;  %v349_v12 = vlaneseq  ;;  %vm328_vm3 = vcmask 257024   ;;  %v983_v30 = vmov 0   ;;  %vm358_vm4 = vcmask 3072  }
  0x73   : > { %s1262_s18 = smov (!%p310_p9, %s965_s18), 1  ;;  %726 = vmatprep.mubr.msk.f32.mxu1 %vm981_vm0, %v982_v1  ;;  %733 = vmatprep.mubr.msk.f32.mxu0 %vm981_vm0, %v982_v1  ;;  %v321_v2 = vld [vmem:[%s273_s30] sm:$0xf]  ;;  %v365_v8 = vmul.f32 %v362_v6, %v362_v6  ;;  %v366_v9 = vmul.f32 %v363_v7, %v363_v7  ;;  %v741_v10 = vpack.c.bf16 %v363_v7, %v362_v6  ;;  %v320_v13 = vld [vmem:[%s1189_s23] sm:$0xf]  ;;  %vm360_vm5 = vcmask 122880  }
  0x74   : > { %s312_s25 = scalar_lea.vmem %s1239_s3, %s1262_s18  ;;  %v322_v4 = vadd.f32 1e-08, %v321_v2  ;;  %v350_v14 = vshrl.u32 %v349_v12, 7  ;;  %v337_v15 = vmul.f32 %v320_v13, %v320_v13  ;;  %817 = vset.pattern.permute.xlu1 %v983_v30  ;;  %818 = vset.pattern.permute.xlu0 %v983_v30  ;;  %361 = vst.msk [vmem:[#allocation5] sm:$0x1] %vm360_vm5, %v982_v1  ;;  %vm535_vm6 = vcmask 125952   ;;  %s315_s1 = scalar_lea.vmem %s1240_s4, %s1262_s18 }
  0x75   : > { %v323_v3 = vld [vmem:[%s312_s25] sm:$0x1]  ;;  %v737_v11 = vpack.c.bf16 %v366_v9, %v365_v8  ;;  %743 = vmatpush3.bf16.xpose.msk.msra.mxu0 %vm738_vm2, %v741_v10  ;;  %vm568_vm7 = vcmask 0  }
  0x76   : > { %v324_v5 = vadd.f32 1e-08, %v323_v3  ;;  %819 = vlog2.f32 %v322_v4  ;;  %v351_v19 = vsub.s32 0, %v350_v14 }
  0x77   : > { %821 = vrcp.f32 %v322_v4  ;;  %739 = vmatpush3.bf16.xpose.msk.msra.mxu1 %vm738_vm2, %v737_v11 }
  0x78   : > { %823 = vlog2.f32 %v324_v5 }
  0x7b   : > { %v553_v0 = vld [vmem:[#allocation5] sm:$0x1] }
  0x80   : > { %v820_v16 = vpop.eup %819 }
  0x81   : > { %v822_v17 = vpop.eup %821  ;;  %v333_v18 = vmul.f32 0.6931472, %v820_v16 }
  0x82   : > { %v824_v20 = vpop.eup %823  ;;  %v327_v21 = vmul.f32 -0.5, %v822_v17  ;;  %v338_v22 = vmul.f32 %v822_v17, %v337_v15  ;;  %v330_v23 = vmul.f32 %v822_v17, %v320_v13 }
  0x83   : > { %v334_v24 = vsel %vm328_vm3, %v333_v18, 0.0  ;;  %v347_v25 = vmul.f32 0.6931472, %v824_v20 }
  0x84   : > { %335 = vadd.xlane.f32.xlu0 %v334_v24  ;;  %329 = vst.msk [vmem:[#allocation2] sm:$0xf] %vm328_vm3, %v327_v21  ;;  %331 = vst.msk [vmem:[#allocation3] sm:$0xf] %vm328_vm3, %v330_v23  ;;  %v339_v26 = vsel %vm328_vm3, %v338_v22, 0.0 }
  0x85   : > { %v352_v27 = vrot.slane %v347_v25, %v351_v19 }
  0x87   : > { %354 = vbcast.lane.b32.xlu1 %v352_v27, 256 }
  0x88   : > { %340 = vadd.xlane.f32.xlu0 %v339_v26 }
  0x8b   : > { %v364_v28 = vld [vmem:[#allocation2] sm:$0xf]  ;;  %v447_v29 = vld [vmem:[#allocation3] sm:$0xf] }
  0x8c   : > { %727 = vmatmul.mubr.msk.f32.vlgmr.msra.gmra.mrb[0].mxu1 %vm367_vm1, %v364_v28  ;;  %734 = vmatmul.mubr.msk.f32.vlgmr.msra.gmra.mrb[0].mxu0 %vm367_vm1, %v447_v29 }
  0xf9   : > { %v355_v36 = vpop.permute.xlu1 %354 }
 0x111   : > { %v336_v31 = vpop.xlane.xlu0 %335 }
 0x112   : > { %v342_v32 = vmul.f32 0.5, %v336_v31 }
 0x114   : > { %v343_v34 = vsub.f32 -29.406033, %v342_v32 }
 0x115   : > { %v341_v33 = vpop.xlane.xlu0 %340 }
 0x116   : > { %v344_v35 = vmul.f32 0.5, %v341_v33 }
 0x118   : > { %v345_v37 = vsub.f32 %v343_v34, %v344_v35 }
 0x11a   : > { %v357_v38 = vadd.f32 %v355_v36, %v345_v37 }
 0x11c   : > { %359 = vst.msk [vmem:[#allocation4] sm:$0xf] %vm358_vm4, %v357_v38 }
 0x123   : > { %v527_v39 = vld [vmem:[#allocation4] sm:$0xf] }
 0x124   : > { %530 = vperm.xlu1 %817, %v527_v39  }
 0x15f   : > { %v443_v40 = vpop.f32.mrb[0].mxu1  ;;  %v523_v41 = vpop.f32.mrb[0].mxu0 }
 0x160   : > { %v744_v42 = vadd.f32 %v523_v41, %v443_v40  ;;  %v728_v43 = vpop.f32.mrb[1].mxu1  ;;  %v735_v44 = vpop.f32.mrb[1].mxu0 }
 0x1a3   : > { %v531_v45 = vpop.permute.xlu1 %530 }
 0x1a4   : > { %v745_v46 = vadd.f32 %v744_v42, %v531_v45 }
 0x1a6   : > { %v536_v47 = vsel %vm535_vm6, %v745_v46, -inf }
 0x1a7   : > { %v537_v48 = vrot.slane %v536_v47, 4 }
 0x1a9   : > { %v538_v49 = vmax.f32 %v536_v47, %v537_v48 }
 0x1ab   : > { %v539_v50 = vrot.slane %v538_v49, 2 }
 0x1ad   : > { %v540_v51 = vmax.f32 %v538_v49, %v539_v50 }
 0x1af   : > { %v541_v52 = vrot.slane %v540_v51, 1 }
 0x1b1   : > { %v542_v53 = vmax.f32 %v540_v51, %v541_v52 }
 0x1b3   : > { %v543_v54 = vsub.f32 %v745_v46, %v542_v53  ;;  %v554_v3 = vadd.f32 %v553_v0, %v542_v53 }
 0x1b5   : > { %v544_v55 = vmul.f32 1.442695, %v543_v54 }
 0x1b7   : > { %825 = vpow2.f32 %v544_v55 }
 0x1c1   : > { %v826_v56 = vpop.eup %825 }
 0x1c2   : > { %v546_v57 = vsel %vm535_vm6, %v826_v56, 0.0 }
 0x1c3   : > { %v547_v58 = vrot.slane %v546_v57, 4 }
 0x1c5   : > { %v548_v59 = vadd.f32 %v547_v58, %v546_v57 }
 0x1c7   : > { %v549_v60 = vrot.slane %v548_v59, 2 }
 0x1c9   : > { %v550_v61 = vadd.f32 %v549_v60, %v548_v59 }
 0x1cb   : > { %v551_v62 = vrot.slane %v550_v61, 1 }
 0x1cd   : > { %v552_v63 = vadd.f32 %v551_v62, %v550_v61 }
 0x1cf   : > { %827 = vlog2.f32 %v552_v63 }
 0x1d9   : > { %v828_v1 = vpop.eup %827 }
 0x1da   : > { %v556_v2 = vmul.f32 0.6931472, %v828_v1 }
 0x1dc   : > { %v557_v4 = vadd.f32 %v556_v2, %v554_v3 }
 0x1de   : > { %559 = vst.msk [vmem:[#allocation5] sm:$0x1] %vm360_vm5, %v557_v4 }
 0x1e5   : > { %v563_v5 = vld [vmem:[#allocation5] sm:$0x1] }
 0x1e6   : > { %v564_v6 = vsel %vm360_vm5, %v563_v5, 0.0 }
 0x1e7   : > { %565 = vadd.xlane.f32.xlu0 %v564_v6 }
 0x274   : > { %v566_v7 = vpop.xlane.xlu0 %565 }
 0x275   : > { %v567_v8 = vmul.f32 0.0625, %v566_v7 }
 0x277   : > { %569 = vst.msk [vmem:[%s315_s1] sm:$0x1] %vm568_vm7, %v567_v8 }
 0x278 PF: > { %s20_s20 = sadd.s32 1, %s973_s20   ;;  %s1254_s15 = smov %s957_s16 }
 0x279   : > { %p17_p1 = scmp.ge.s32.totalorder %s20_s20, 4   ;;  %s1255_s16 = smov %s961_s17 }
 0x27a   : > { %s1256_s17 = smov %s1056_s26  ;;  %s1257_s18 = smov %s969_s19 }
 0x27b   : > { %s1258_s19 = smov %s1260_s22  ;;  %19 = sbr.rel (!%p17_p1) target bundleno = 8 (0x8), region = 111 }
 0x282   :  { %587 = vsyncpa [#allocation7], 1 }
 0x283   :  { %589 = vsyncpa [#allocation7 + $0x1], 1 }
 0x284   :  { %590 = vsyncpa [#allocation9], 1 }
 0x285   :  { %592 = vsyncpa [#allocation9 + $0x1], 1 }

</bundles_post_ra>
